<compile_context>
chip_gen: v7x
topology: tpu7x:2x2x1
jax: 0.10.0
libtpu: 0.0.40
codegen_flags: <defaults>
</compile_context>

<pallas_src>
import jax
import jax.numpy as jnp
from jax.experimental import pallas as pl
from jax.experimental.pallas import tpu as pltpu


# -----------------------------------------------------------------------------
# Kernels
# -----------------------------------------------------------------------------
def _mix_kernel(w_ref, x_ref, o_ref):
    # w_ref: (L_pad,) SMEM   softmax(layer weights) * gamma  (zero-padded)
    # x_ref: (Lb, Ts, H) VMEM  Lb layer slices of one batch element (src dtype)
    # o_ref: (Ts, H) VMEM f32, resident accumulator across the layer-block axis
    jb = pl.program_id(2)
    lb = x_ref.shape[0]
    base = jb * lb

    acc = w_ref[base] * x_ref[0].astype(jnp.float32)
    for i in range(1, lb):
        acc = acc + w_ref[base + i] * x_ref[i].astype(jnp.float32)

    @pl.when(jb == 0)
    def _():
        o_ref[...] = jnp.zeros_like(o_ref)

    o_ref[...] = o_ref[...] + acc


def _mix_layernorm_kernel(w_ref, inv_n_ref, x_ref, m_ref, o_ref):
    # w_ref:     (L_pad,) SMEM  softmax(layer weights) * gamma (zero-padded)
    # inv_n_ref: (B,) SMEM      1 / (mask[b].sum() * H)   (hoisted to wrapper)
    # x_ref:     (Lb, S, H) VMEM  Lb layer slices of batch element b (src dtype)
    # m_ref:     (S, 1) VMEM f32 broadcast mask (constant across jb -> 1 DMA/b)
    # o_ref:     (S, H) VMEM f32, resident accumulator across layer-block axis
    b = pl.program_id(0)
    jb = pl.program_id(1)
    lb = x_ref.shape[0]
    base = jb * lb

    bmask = m_ref[...]                        # (S, 1), broadcasts over H
    inv_n = inv_n_ref[b]                      # scalar

    acc = None
    for i in range(lb):
        x = x_ref[i].astype(jnp.float32)      # (S, H)
        xm = x * bmask
        mean = jnp.sum(xm) * inv_n            # masked mean
        diff = x - mean
        dm = diff * bmask                     # == (x*m - mean)*m for m in {0,1}
        var = jnp.sum(dm * dm) * inv_n        # two-pass masked variance
        inv_std = jax.lax.rsqrt(var + 1e-12)  # EUP, not a per-element divide
        # TODO(synk): on v7x the two big reduces could be moved onto the idle
        # MXU (mask-row matvec) to dodge VALU saturation; neutral on v5e/v6e.
        contrib = (w_ref[base + i] * inv_std) * diff
        acc = contrib if acc is None else acc + contrib

    @pl.when(jb == 0)
    def _():
        o_ref[...] = jnp.zeros_like(o_ref)

    o_ref[...] = o_ref[...] + acc


# -----------------------------------------------------------------------------
# Wrapper (parameter transform + pallas_call plumbing)
# -----------------------------------------------------------------------------
def _vmem_budget_bytes():
    """~70% of per-core physical VMEM; falls back to the v7x 64 MiB floor."""
    try:
        phys = int(pltpu.get_tpu_info().vmem_capacity_bytes)
    except Exception:
        phys = 64 << 20
    return int(phys * 0.70)


def _pick_s_tiles(batch, seq):
    """Split S into parallel tiles when B alone can't feed both TensorCores."""
    if batch >= 4:
        return 1
    for n_s in (4, 2):
        if seq % n_s == 0 and (seq // n_s) % 8 == 0:
            return n_s
    return 1


def layerwise_attention(tensors, scalar_parameters, gamma, mask=None,
                        layer_norm=False, layers_per_block=None,
                        vmem_budget_bytes=None):
    """tensors: list of L arrays (B, S, H), or a pre-stacked (L, B, S, H) array.

    Returns (B, S, H) float32, matching the PyTorch forward.
    """
    if isinstance(tensors, (list, tuple)):
        x = jnp.stack(tensors, axis=1)               # (B, L, S, H), src dtype
    else:
        x = jnp.moveaxis(tensors, 0, 1)              # (L,B,S,H) -> (B,L,S,H)
    B, L, S, H = x.shape

    # Glue: softmax over the L scalar parameters, gamma folded into the weights.
    w = jax.nn.softmax(scalar_parameters.astype(jnp.float32).reshape(L), axis=0)
    w = w * gamma.astype(jnp.float32).reshape(())                        # (L,)

    if vmem_budget_bytes is None:
        vmem_budget_bytes = _vmem_budget_bytes()

    n_s = 1 if layer_norm else _pick_s_tiles(B, S)   # LN stats need full (S,H)
    ts = S // n_s

    # Size the layer block: double-buffered (Lb, Ts, H) input slab plus the
    # double-buffered f32 output block (+ mask) must fit the VMEM budget.
    x_item = jnp.dtype(x.dtype).itemsize
    per_layer = ts * H * x_item
    fixed = 2 * ts * H * 4                 # double-buffered f32 output block
    if layer_norm:
        fixed += 2 * S * 4                 # mask block
    fixed += 2 << 20                       # slack for compiler scratch
    avail = max(vmem_budget_bytes - fixed, 2 * per_layer)
    lb = max(1, min(L, int(avail // (2 * per_layer))))
    if layers_per_block is not None:
        lb = max(1, min(L, int(layers_per_block)))

    n_lb = pl.cdiv(L, lb)
    l_pad = n_lb * lb
    if l_pad > L:                          # zero-pad layers; padded w == 0
        x = jnp.concatenate(
            [x, jnp.zeros((B, l_pad - L, S, H), x.dtype)], axis=1)
        w = jnp.concatenate([w, jnp.zeros((l_pad - L,), jnp.float32)])

    vmem_limit = int(min(max(vmem_budget_bytes,
                             2 * lb * per_layer + fixed + (4 << 20)),
                         128 << 20))

    out_shape = jax.ShapeDtypeStruct((B, S, H), jnp.float32)
    smem = pl.BlockSpec(memory_space=pltpu.MemorySpace.SMEM)

    if not layer_norm:
        cost = pl.CostEstimate(
            flops=2 * L * B * S * H,
            transcendentals=0,
            bytes_accessed=L * B * S * H * x_item + B * S * H * 4)
        grid_spec = pl.GridSpec(
            grid=(B, n_s, n_lb),
            in_specs=[
                smem,                                                     # w
                pl.BlockSpec((None, lb, ts, H),
                             lambda b, si, jb: (b, jb, si, 0)),           # x
            ],
            out_specs=pl.BlockSpec((None, ts, H),
                                   lambda b, si, jb: (b, si, 0)),
        )
        return pl.pallas_call(
            _mix_kernel, out_shape=out_shape, grid_spec=grid_spec,
            compiler_params=pltpu.CompilerParams(
                dimension_semantics=("parallel", "parallel", "arbitrary"),
                vmem_limit_bytes=vmem_limit),
            cost_estimate=cost,
        )(w, x)

    mask_f = mask.astype(jnp.float32).reshape(B, S)
    # Hoist per-batch normalizer: 1 / num_elements_not_masked. Guarded so a
    # fully-masked row yields finite output (intentional divergence from the
    # reference, which would produce NaN for that row).
    n = mask_f.sum(axis=1) * jnp.float32(H)                               # (B,)
    inv_n = 1.0 / jnp.maximum(n, 1.0)                                     # (B,)
    mask3 = mask_f.reshape(B, S, 1)

    cost = pl.CostEstimate(
        flops=9 * L * B * S * H,
        transcendentals=B * L,
        bytes_accessed=L * B * S * H * x_item + B * S * H * 4 + B * S * 4)
    grid_spec = pl.GridSpec(
        grid=(B, n_lb),
        in_specs=[
            smem,                                                         # w
            smem,                                                         # inv_n
            pl.BlockSpec((None, lb, S, H), lambda b, jb: (b, jb, 0, 0)),  # x
            pl.BlockSpec((None, S, 1), lambda b, jb: (b, 0, 0)),          # mask
        ],
        out_specs=pl.BlockSpec((None, S, H), lambda b, jb: (b, 0, 0)),
    )
    return pl.pallas_call(
        _mix_layernorm_kernel, out_shape=out_shape, grid_spec=grid_spec,
        compiler_params=pltpu.CompilerParams(
            dimension_semantics=("parallel", "arbitrary"),
            vmem_limit_bytes=vmem_limit),
        cost_estimate=cost,
    )(w, inv_n, x, mask3)
    # TODO(synk): training-time scalar dropout (dropout_mask.uniform_()) and the
    # 'sparsemax' layer_transformation are host-side branches on the L weights;
    # not part of the inference forward implemented here.


# -----------------------------------------------------------------------------
# Pure-JAX reference (mirrors the PyTorch forward exactly, two-pass variance)
# -----------------------------------------------------------------------------
def reference(tensors, scalar_parameters, gamma, mask=None, layer_norm=False):
    w = jax.nn.softmax(scalar_parameters.astype(jnp.float32), axis=0)
    g = gamma.reshape(())
    tensors = [t.astype(jnp.float32) for t in tensors]
    if not layer_norm:
        out = sum(w[i] * t for i, t in enumerate(tensors))
        return g * out
    B, S, H = tensors[0].shape
    mask_f = mask.astype(jnp.float32)
    bmask = mask_f[:, :, None]
    n = mask_f.sum(1) * H                                        # (B,)
    acc = jnp.zeros((B, S, H), jnp.float32)
    for i, t in enumerate(tensors):
        tm = t * bmask
        mean = (tm.reshape(B, -1).sum(1) / n).reshape(B, 1, 1)
        var = (((tm - mean) * bmask) ** 2).reshape(B, -1).sum(1) / n
        normed = (t - mean) / jnp.sqrt(var + 1e-12).reshape(B, 1, 1)
        acc = acc + w[i] * normed
    return g * acc


# -----------------------------------------------------------------------------
if __name__ == "__main__":
    L, B, S, H = 4, 2, 16, 128
    keys = jax.random.split(jax.random.PRNGKey(0), L)
    tensors = [jax.random.normal(keys[i], (B, S, H), dtype=jnp.float32)
               for i in range(L)]

    # Deterministic parameter init matching __init__:
    # layer_weights default -> all zeros; gamma -> 1.0
    scalar_parameters = jnp.zeros((L,), jnp.float32)
    gamma = jnp.ones((1,), jnp.float32)

    # mask with a few padded positions
    lengths = jnp.array([S, S - 5], dtype=jnp.int32)
    mask = (jnp.arange(S)[None, :] < lengths[:, None]).astype(jnp.float32)

    # 1) mix path (f32); B < 4 so the S axis is split into parallel tiles
    out0 = jax.block_until_ready(
        layerwise_attention(tensors, scalar_parameters, gamma,
                            layer_norm=False))
    ref0 = reference(tensors, scalar_parameters, gamma, layer_norm=False)
    assert out0.shape == (B, S, H) and out0.dtype == jnp.float32
    assert jnp.allclose(out0, ref0, atol=1e-5, rtol=1e-5)

    # 2) mix path with bf16 activations kept bf16 in HBM
    tensors_bf16 = [t.astype(jnp.bfloat16) for t in tensors]
    out0_bf = jax.block_until_ready(
        layerwise_attention(tensors_bf16, scalar_parameters, gamma,
                            layer_norm=False))
    assert out0_bf.dtype == jnp.float32
    assert jnp.allclose(out0_bf, ref0, atol=5e-2, rtol=5e-2)

    # 3) layer_norm path (f32)
    out1 = jax.block_until_ready(
        layerwise_attention(tensors, scalar_parameters, gamma,
                            mask=mask, layer_norm=True))
    ref1 = reference(tensors, scalar_parameters, gamma,
                     mask=mask, layer_norm=True)
    assert out1.shape == (B, S, H)
    assert jnp.allclose(out1, ref1, atol=5e-4, rtol=5e-4)

    # 4) forced small layer-block: L=5 with layers_per_block=2 exercises
    #    multi-step accumulation across layer blocks AND layer zero-padding.
    L2 = 5
    keys2 = jax.random.split(jax.random.PRNGKey(1), L2)
    tensors2 = [jax.random.normal(keys2[i], (B, S, H), dtype=jnp.float32)
                for i in range(L2)]
    sp2 = jnp.linspace(-0.5, 0.5, L2, dtype=jnp.float32)
    gamma2 = jnp.array([1.25], jnp.float32)

    out2 = jax.block_until_ready(
        layerwise_attention(tensors2, sp2, gamma2, layer_norm=False,
                            layers_per_block=2))
    ref2 = reference(tensors2, sp2, gamma2, layer_norm=False)
    assert jnp.allclose(out2, ref2, atol=1e-5, rtol=1e-5)

    out3 = jax.block_until_ready(
        layerwise_attention(tensors2, sp2, gamma2, mask=mask, layer_norm=True,
                            layers_per_block=2))
    ref3 = reference(tensors2, sp2, gamma2, mask=mask, layer_norm=True)
    assert jnp.allclose(out3, ref3, atol=5e-4, rtol=5e-4)

    print("KERNEL_OK")
</pallas_src>

<mosaic_0001>
module attributes {stable_mosaic.version = 11 : i64} {
  func.func @_mix_kernel(%arg0: i32, %arg1: i32, %arg2: i32, %arg3: memref<4xf32, #tpu.memory_space<smem>>, %arg4: memref<1x4x8x128xf32, #tpu.memory_space<vmem>>, %arg5: memref<1x8x128xf32, #tpu.memory_space<vmem>>) attributes {dimension_semantics = [#tpu.dimension_semantics<parallel>, #tpu.dimension_semantics<parallel>, #tpu.dimension_semantics<arbitrary>], iteration_bounds = array<i64: 2, 2, 1>, scalar_prefetch = 0 : i64, scratch_operands = 0 : i64, tpu.core_type = #tpu.core_type<tc>, window_params = [{transform_indices = @transform_0, window_bounds = array<i64: 4>}, {transform_indices = @transform_1, window_bounds = array<i64: 1, 4, 8, 128>}, {transform_indices = @transform_2, window_bounds = array<i64: 1, 8, 128>}]} {
    %c4_i32 = arith.constant 4 : i32
    %0 = arith.muli %arg2, %c4_i32 : i32
    %1 = arith.index_cast %0 : i32 to index
    %2 = memref.load %arg3[%1] : memref<4xf32, #tpu.memory_space<smem>>
    %c0 = arith.constant 0 : index
    %c0_0 = arith.constant 0 : index
    %c0_1 = arith.constant 0 : index
    %c0_2 = arith.constant 0 : index
    %3 = vector.load %arg4[%c0, %c0_0, %c0_1, %c0_2] : memref<1x4x8x128xf32, #tpu.memory_space<vmem>>, vector<1x1x8x128xf32>
    %4 = vector.shape_cast %3 : vector<1x1x8x128xf32> to vector<8x128xf32>
    %5 = vector.broadcast %2 : f32 to vector<8x128xf32>
    %6 = arith.mulf %5, %4 : vector<8x128xf32>
    %c1_i32 = arith.constant 1 : i32
    %7 = arith.addi %0, %c1_i32 : i32
    %8 = arith.index_cast %7 : i32 to index
    %9 = memref.load %arg3[%8] : memref<4xf32, #tpu.memory_space<smem>>
    %c0_3 = arith.constant 0 : index
    %c1 = arith.constant 1 : index
    %c0_4 = arith.constant 0 : index
    %c0_5 = arith.constant 0 : index
    %10 = vector.load %arg4[%c0_3, %c1, %c0_4, %c0_5] : memref<1x4x8x128xf32, #tpu.memory_space<vmem>>, vector<1x1x8x128xf32>
    %11 = vector.shape_cast %10 : vector<1x1x8x128xf32> to vector<8x128xf32>
    %12 = vector.broadcast %9 : f32 to vector<8x128xf32>
    %13 = arith.mulf %12, %11 : vector<8x128xf32>
    %14 = arith.addf %6, %13 : vector<8x128xf32>
    %c2_i32 = arith.constant 2 : i32
    %15 = arith.addi %0, %c2_i32 : i32
    %16 = arith.index_cast %15 : i32 to index
    %17 = memref.load %arg3[%16] : memref<4xf32, #tpu.memory_space<smem>>
    %c0_6 = arith.constant 0 : index
    %c2 = arith.constant 2 : index
    %c0_7 = arith.constant 0 : index
    %c0_8 = arith.constant 0 : index
    %18 = vector.load %arg4[%c0_6, %c2, %c0_7, %c0_8] : memref<1x4x8x128xf32, #tpu.memory_space<vmem>>, vector<1x1x8x128xf32>
    %19 = vector.shape_cast %18 : vector<1x1x8x128xf32> to vector<8x128xf32>
    %20 = vector.broadcast %17 : f32 to vector<8x128xf32>
    %21 = arith.mulf %20, %19 : vector<8x128xf32>
    %22 = arith.addf %14, %21 : vector<8x128xf32>
    %c3_i32 = arith.constant 3 : i32
    %23 = arith.addi %0, %c3_i32 : i32
    %24 = arith.index_cast %23 : i32 to index
    %25 = memref.load %arg3[%24] : memref<4xf32, #tpu.memory_space<smem>>
    %c0_9 = arith.constant 0 : index
    %c3 = arith.constant 3 : index
    %c0_10 = arith.constant 0 : index
    %c0_11 = arith.constant 0 : index
    %26 = vector.load %arg4[%c0_9, %c3, %c0_10, %c0_11] : memref<1x4x8x128xf32, #tpu.memory_space<vmem>>, vector<1x1x8x128xf32>
    %27 = vector.shape_cast %26 : vector<1x1x8x128xf32> to vector<8x128xf32>
    %28 = vector.broadcast %25 : f32 to vector<8x128xf32>
    %29 = arith.mulf %28, %27 : vector<8x128xf32>
    %30 = arith.addf %22, %29 : vector<8x128xf32>
    %c0_i32 = arith.constant 0 : i32
    %31 = arith.cmpi eq, %arg2, %c0_i32 : i32
    %32 = arith.extui %31 : i1 to i32
    %c0_i32_12 = arith.constant 0 : i32
    %33 = arith.cmpi ne, %32, %c0_i32_12 : i32
    scf.if %33 {
      %cst = arith.constant 0.000000e+00 : f32
      %40 = vector.broadcast %cst : f32 to vector<8x128xf32>
      %c0_19 = arith.constant 0 : index
      %c0_20 = arith.constant 0 : index
      %c0_21 = arith.constant 0 : index
      %41 = vector.load %arg5[%c0_19, %c0_20, %c0_21] : memref<1x8x128xf32, #tpu.memory_space<vmem>>, vector<1x8x128xf32>
      %42 = vector.shape_cast %41 : vector<1x8x128xf32> to vector<8x128xf32>
      %43 = vector.shape_cast %40 : vector<8x128xf32> to vector<1x8x128xf32>
      tpu.vector_store %arg5[%c0_19, %c0_20, %c0_21], %43 {strides = array<i32>} : memref<1x8x128xf32, #tpu.memory_space<vmem>>, vector<1x8x128xf32>,
    } else {
    }
    %c0_13 = arith.constant 0 : index
    %c0_14 = arith.constant 0 : index
    %c0_15 = arith.constant 0 : index
    %34 = vector.load %arg5[%c0_13, %c0_14, %c0_15] : memref<1x8x128xf32, #tpu.memory_space<vmem>>, vector<1x8x128xf32>
    %35 = vector.shape_cast %34 : vector<1x8x128xf32> to vector<8x128xf32>
    %36 = arith.addf %35, %30 : vector<8x128xf32>
    %c0_16 = arith.constant 0 : index
    %c0_17 = arith.constant 0 : index
    %c0_18 = arith.constant 0 : index
    %37 = vector.load %arg5[%c0_16, %c0_17, %c0_18] : memref<1x8x128xf32, #tpu.memory_space<vmem>>, vector<1x8x128xf32>
    %38 = vector.shape_cast %37 : vector<1x8x128xf32> to vector<8x128xf32>
    %39 = vector.shape_cast %36 : vector<8x128xf32> to vector<1x8x128xf32>
    tpu.vector_store %arg5[%c0_16, %c0_17, %c0_18], %39 {strides = array<i32>} : memref<1x8x128xf32, #tpu.memory_space<vmem>>, vector<1x8x128xf32>,
    return
  }
  func.func @transform_0(%arg0: i32, %arg1: i32, %arg2: i32) -> i32 {
    %c0_i32 = arith.constant 0 : i32
    %c0_i32_0 = arith.constant 0 : i32
    return %c0_i32 : i32
  }
  func.func @transform_1(%arg0: i32, %arg1: i32, %arg2: i32) -> (i32, i32, i32, i32) {
    %c0_i32 = arith.constant 0 : i32
    %c0_i32_0 = arith.constant 0 : i32
    return %arg0, %arg2, %arg1, %c0_i32 : i32, i32, i32, i32
  }
  func.func @transform_2(%arg0: i32, %arg1: i32, %arg2: i32) -> (i32, i32, i32) {
    %c0_i32 = arith.constant 0 : i32
    %c0_i32_0 = arith.constant 0 : i32
    return %arg0, %arg1, %c0_i32 : i32, i32, i32
  }
}

</mosaic_0001>

<bundles_post_ra>
// kernel: tpu_custom_call.1
= control target key start
LH: loop header
LB: loop body
LE: loop exit
PB: predicated region body
PF: predicated region fallthrough
CT: control target
= control target key end

     0   :  { %s862_s0 = inlined_call_operand.hbm [shape: f32[4], index: 0, kind: input, shape index: {}]   ;;  %s863_s1 = inlined_call_operand.hbm [shape: f32[2,4,16,128], index: 1, kind: input, shape index: {}]   ;;  %s864_s2 = inlined_call_operand.hbm [shape: f32[2,16,128], index: 2, kind: output, shape index: {}]  }
   0x1   :  { %871 = sst [smem:[#allocation13_spill]] %s862_s0 }
   0x2   :  { %7 = vsyncpa [#allocation5], 0 }
   0x3   :  { %8 = vsyncpa [#allocation3], 0 }
   0x4   :  { %10 = vsyncpa [#allocation3 + $0x1], 0 }
   0x5   :  { %11 = vsyncpa [#allocation4], 0 }
   0x6   :  { %13 = vsyncpa [#allocation4 + $0x1], 0  ;;  %s640_s9 = smov 0   ;;  %s642_s10 = smov 0  }
   0x7   :  { %s644_s11 = smov 0   ;;  %s646_s12 = smov 0  }
   0x8   :  { %s648_s13 = smov 0   ;;  %s650_s14 = smov 0  }
   0x9   :  { %s652_s15 = smov 0   ;;  %s654_s16 = smov 0  }
   0xa LB: > { %s356_s17 = sadd.s32 4294967295, %s617_s16   ;;  %s357_s18 = sadd.s32 4294967294, %s617_s16   ;;  %s617_s16 = sphi %s654_s16, %s19_s16   ;;  %s613_s15 = sphi %s652_s15, %s895_s15   ;;  %s609_s14 = sphi %s650_s14, %s894_s14   ;;  %s605_s13 = sphi %s648_s13, %s893_s13   ;;  %s601_s12 = sphi %s646_s12, %s892_s12   ;;  %s597_s11 = sphi %s644_s11, %s891_s11   ;;  %s593_s10 = sphi %s642_s10, %s890_s10   ;;  %s589_s9 = sphi %s640_s9, %s889_s9  }
   0xb   : > { %p77_p0 = scmp.ne.s32.totalorder %s597_s11, %s593_s10  ;;  %p78_p1 = scmp.eq.s32.totalorder %s617_s16, 0 }
   0xc   : > { %p83_p2 = scmp.ne.s32.totalorder %s593_s10, %s589_s9  ;;  %p688_p3 = scmp.eq.s32.totalorder %s356_s17, 0 }
   0xd   : > { %p109_p4 = scmp.eq.s32.totalorder %s356_s17, 3  ;;  %p79_p5 = por %p78_p1, %p77_p0 }
   0xe   : > { %s872_s20 = scalar_select %p688_p3, 1, 0 }
   0xf   : > { %p115_p6 = scmp.eq.s32.totalorder %s357_s18, 3  ;;  %p694_p7 = por %p688_p3, %p83_p2 }
  0x10   : > { %p698_p8 = por %p109_p4, %p77_p0  ;;  %p358_p10 = scmp.ge.s32.totalorder %s617_s16, 1 }
  0x11   : > { %s873_s21 = scalar_select %p694_p7, 1, 0 }
  0x12   : > { %s874_s22 = scalar_select %p698_p8, 1, 0 }
  0x13   : > { %p702_p9 = por %p115_p6, %p83_p2  ;;  %p122_p11 = scmp.lt.s32.totalorder %s617_s16, 5 }
  0x14   : > { %p400_p13 = scmp.lt.s32.totalorder %s617_s16, 4  ;;  %p879_p0 = scmp.ne.s32.totalorder %s872_s20, 0 }
  0x15   : > { %s875_s23 = scalar_select %p702_p9, 1, 0 }
  0x16   : > { %p708_p12 = pnand %p358_p10, %p122_p11  ;;  %p715_p3 = pnand %p400_p13, %p79_p5 }
  0x17   : > { %876 = sst [smem:[#allocation11_spill]] %s875_s23  ;;  %s34_s26 = sadd.s32 1, %s609_s14 }
  0x18   : > { %p387_p1 = pneg %p708_p12  ;;  %s38_s27 = sadd.s32 1, %s613_s15 }
  0x19   : > { %p36_p2 = scmp.ge.s32.totalorder %s34_s26, 2  ;;  %s880_s0 = sld [smem:[#allocation13_spill]] }
  0x1a   : > { %p388_p4 = pnand %p387_p1, %p879_p0 }
  0x1c   : > { %p474_p10 = pneg %p388_p4 }
  0x1f   : > { %s472_s30 = scalar_lea.hbm %s880_s0, 16 }
  0x20   : > { %p473_p6 = scmp.ne.s32.totalorder %s880_s0, %s472_s30  ;;  %p479_p5 = scmp.lt.u32.totalorder %s472_s30, %s880_s0 }
  0x22   : > { %p475_p11 = pnand %p474_p10, %p473_p6 }
  0x24   : > { %p476_p9 = pneg %p475_p11 }
  0x26   : > { %p481_p13 = pnand %p479_p5, %p476_p9 }
  0x28   : > { %484 = shalt.err (!%p481_p13)
}
  0x29   : > { %s619_s7 = smov [#allocation2]   ;;  %s897_s26 = smov (%p36_p2, %s34_s26), 0 }
  0x2a   : > { %390 = dma.hbm_to_smem (!%p388_p4), %s880_s0, 16, %s619_s7, [#allocation5]  }
  0x2b   : > { %881 = sst [smem:[#allocation12_spill]] %s897_s26  ;;  %s899_s27 = smov (!%p36_p2, %s38_s27), %s613_s15 }
  0x2c   : > { %s66_s18 = ssub.s32 %s609_s14, %s897_s26  ;;  %s144_s28 = sand.u32 1, %s597_s11  }
  0x2d   : > { %p40_p9 = scmp.ge.s32.totalorder %s899_s27, 2  ;;  %s361_s29 = sshll.u32 %s144_s28, 5 }
  0x2e   : > { %s362_s30 = sshll.u32 %s613_s15, 3  ;;  %s148_s19 = scalar_lea.vmem [#allocation6], %s361_s29 }
  0x2f   : > { %s901_s27 = smov (%p40_p9, %s899_s27), 0  ;;  %s156_s3 = sadd.s32 %s609_s14, %s362_s30 }
  0x30   : > { %s63_s4 = ssub.s32 %s613_s15, %s901_s27  ;;  %s363_s5 = sshll.u32 %s156_s3, 7 }
  0x31   : > { %s67_s6 = sor.u32 %s66_s18, %s63_s4  ;;  %s750_s17 = scalar_lea.hbm %s863_s1, %s363_s5 }
  0x32   : > { %p68_p1 = scmp.eq.s32.totalorder %s67_s6, 0  ;;  %s159_s0 = sshll.u32 %s148_s19, 4  ;;  %s752_s0 = int_to_ptr.vmem [resolvable:$true] %s159_s0 }
  0x33   : > { %s882_s26 = sadd.s32 1, %s597_s11  ;;  %s759_s30 = scalar_lea.sflag [#allocation3], %s144_s28 }
  0x34   : > { %s757_s23 = scalar_select %p68_p1, %s597_s11, %s882_s26  }
  0x35   : > { %s485_s18 = scalar_lea.hbm %s750_s17, 512  ;;  %p487_p4 = pneg %p715_p3 }
  0x36   : > { %p486_p0 = scmp.ne.s32.totalorder %s750_s17, %s485_s18  ;;  %s490_s29 = scalar_lea.hbm %s863_s1, 2048 }
  0x37   : > { %p491_p10 = scmp.lt.u32.totalorder %s750_s17, %s863_s1  ;;  %p492_p11 = scmp.lt.u32.totalorder %s490_s29, %s485_s18 }
  0x38   : > { %p488_p2 = pnand %p487_p4, %p486_p0  ;;  %p494_p13 = scmp.lt.u32.totalorder %s485_s18, %s750_s17 }
  0x39   : > { %p493_p5 = por %p492_p11, %p491_p10 }
  0x3a   : > { %p489_p6 = pneg %p488_p2 }
  0x3b   : > { %p495_p9 = por %p494_p13, %p493_p5 }
  0x3d   : > { %p496_p1 = pnand %p495_p9, %p489_p6 }
  0x3f   : > { %499 = shalt.err (!%p496_p1)
}
  0x40   : > { %s500_s26 = scalar_lea.vmem %s752_s0, 512  ;;  %s620_s28 = smov [#allocation6]  }
  0x41   : > { %p501_p0 = scmp.ne.s32.totalorder %s752_s0, %s500_s26  ;;  %s505_s6 = sshll.u32 %s620_s28, 4  ;;  %s506_s6 = int_to_ptr.vmem [resolvable:$false] %s505_s6 }
  0x42   : > { %s507_s7 = scalar_lea.vmem %s506_s6, 1024  ;;  %p508_p7 = scmp.lt.s32.totalorder %s752_s0, %s506_s6 }
  0x43   : > { %p503_p2 = pnand %p501_p0, %p487_p4  ;;  %p509_p10 = scmp.lt.s32.totalorder %s507_s7, %s500_s26 }
  0x45   : > { %p504_p8 = pneg %p503_p2  ;;  %p510_p11 = por %p509_p10, %p508_p7 }
  0x47   : > { %p511_p5 = pnand %p510_p11, %p504_p8 }
  0x49   : > { %514 = shalt.err (!%p511_p5)
}
  0x4a   : > { %s621_s8 = smov 256   ;;  %s622_s18 = smov 128  }
  0x4b   : > { %s623_s3 = smov 8   ;;  %171 = sbr.rel (%p708_p12) target bundleno = 118 (0x76), region = 28 }
  0x4c   : > { %394 = dma.hbm_to_vmem [thread:$0]  (!%p715_p3), %s750_s17, 512, %s752_s0, %s759_s30, %s621_s8, %s622_s18, %s623_s3  }
  0x4d   : > { %p883_p4 = scmp.ne.s32.totalorder (!%p708_p12), %s872_s20, 0 }
  0x52   : > { %576 = dma.done.wait (%p883_p4), [#allocation5], 16  }
  0x53   : > { %578 = vsyncadd (%p883_p4), [#allocation5], 4294967280  ;;  %s794_s4 = sand.u32 1, %s593_s10   ;;  %p884_p7 = scmp.ne.s32.totalorder %s873_s21, 0 }
  0x54   : > { %s366_s29 = sshll.u32 %s794_s4, 5  ;;  %s178_s19 = scalar_lea.sflag [#allocation3], %s794_s4 }
  0x55   : > { %s181_s5 = scalar_lea.vmem [#allocation6], %s366_s29 }
  0x56   : > { %580 = dma.done.wait (%p884_p7), %s178_s19, 512  }
  0x57   : > { %582 = vsyncadd (%p884_p7), %s178_s19, 4294966784 }
  0x58   : > { %186 = sfence }
  0x59   : > { %s205_s0 = sld [smem:[#allocation2]]  ;;  %s368_s20 = sld [smem:[#allocation2 + $0x1]]  ;;  %v206_v0 = vld [vmem:[%s181_s5] sm:$0xff]  ;;  %v369_v1 = vld [vmem:[%s181_s5 + $0x8] sm:$0xff]  ;;  %v371_v3 = vld [vmem:[%s181_s5 + $0x10] sm:$0xff] }
  0x5a   : > { %s370_s24 = sld [smem:[#allocation2 + $0x2]]  ;;  %s372_s25 = sld [smem:[#allocation2 + $0x3]]  ;;  %v373_v6 = vld [vmem:[%s181_s5 + $0x18] sm:$0xff] }
  0x5b   : > { %s367_s17 = sshll.u32 %s794_s4, 3  ;;  %s375_s30 = sshll.u32 %s605_s13, 1 }
  0x5c   : > { %s250_s21 = sadd.s32 %s601_s12, %s375_s30  ;;  %s202_s28 = scalar_lea.vmem [#allocation7], %s367_s17 }
  0x5d   : > { %s376_s26 = sshll.u32 %s250_s21, 7  ;;  %s254_s6 = sshll.u32 %s202_s28, 4  ;;  %s810_s6 = int_to_ptr.vmem [resolvable:$true] %s254_s6 }
  0x5e   : > { %s808_s18 = scalar_lea.hbm %s864_s2, %s376_s26  ;;  %s239_s13 = scalar_lea.sflag [#allocation4], %s794_s4 }
  0x5f   : > { %v207_v2 = vstv %s205_s0  ;;  %v213_v5 = vstv %s368_s20  ;;  %s515_s3 = scalar_lea.vmem %s810_s6, 128  ;;  %p885_p8 = scmp.ne.s32.totalorder %s874_s22, 0 }
  0x60   : > { %v208_v4 = vmul.f32 %v207_v2, %v206_v0  ;;  %v214_v7 = vmul.f32 %v369_v1, %v213_v5  ;;  %v220_v8 = vstv %s370_s24  ;;  %v227_v9 = vstv %s372_s25  ;;  %p516_p3 = scmp.ne.s32.totalorder %s810_s6, %s515_s3  ;;  %s624_s12 = smov [#allocation7]  }
  0x61   : > { %v221_v10 = vmul.f32 %v371_v3, %v220_v8  ;;  %v228_v12 = vmul.f32 %v373_v6, %v227_v9  ;;  %s519_s29 = sshll.u32 %s624_s12, 4  ;;  %s520_s29 = int_to_ptr.vmem [resolvable:$false] %s519_s29 }
  0x62   : > { %v215_v11 = vadd.f32 %v214_v7, %v208_v4  ;;  %p517_p12 = pnand %p516_p3, %p885_p8  ;;  %s521_s19 = scalar_lea.vmem %s520_s29, 256 }
  0x63   : > { %p522_p13 = scmp.lt.s32.totalorder %s810_s6, %s520_s29  ;;  %p523_p9 = scmp.lt.s32.totalorder %s521_s19, %s515_s3 }
  0x64   : > { %v222_v13 = vadd.f32 %v221_v10, %v215_v11  ;;  %p518_p6 = pneg %p517_p12 }
  0x65   : > { %p524_p1 = por %p523_p9, %p522_p13 }
  0x66   : > { %v229_v14 = vadd.f32 %v228_v12, %v222_v13 }
  0x67   : > { %p525_p0 = pnand %p524_p1, %p518_p6 }
  0x68   : > { %237 = vst [vmem:[%s202_s28] sm:$0xff] %v229_v14 }
  0x69   : > { %528 = shalt.err (!%p525_p0)
}
  0x6a   : > { %s529_s4 = scalar_lea.hbm %s808_s18, 128  ;;  %s533_s20 = scalar_lea.hbm %s864_s2, 512 }
  0x6b   : > { %p530_p2 = scmp.ne.s32.totalorder %s808_s18, %s529_s4  ;;  %p534_p5 = scmp.lt.u32.totalorder %s808_s18, %s864_s2 }
  0x6c   : > { %p535_p4 = scmp.lt.u32.totalorder %s533_s20, %s529_s4  ;;  %p537_p3 = scmp.lt.u32.totalorder %s529_s4, %s808_s18 }
  0x6d   : > { %p531_p10 = pnand %p530_p2, %p885_p8 }
  0x6e   : > { %p536_p7 = por %p535_p4, %p534_p5 }
  0x6f   : > { %p532_p11 = pneg %p531_p10 }
  0x70   : > { %p538_p12 = por %p537_p3, %p536_p7 }
  0x72   : > { %p539_p6 = pnand %p538_p12, %p532_p11 }
  0x74   : > { %542 = shalt.err (!%p539_p6)
}
  0x75   : > { %385 = dma.vmem_to_hbm [thread:$0]  (%p885_p8), %s810_s6, 128, %s808_s18, %s239_s13  }
  0x76 PF: > { %s886_s17 = sld [smem:[#allocation11_spill]]  ;;  %p402_p13 = scmp.ge.s32.totalorder %s617_s16, 2 }
  0x77   : > { %s266_s30 = sand.u32 1, %s589_s9  }
  0x78   : > { %s267_s21 = scalar_lea.sflag [#allocation4], %s266_s30 }
  0x7c   : > { %p887_p9 = scmp.ne.s32.totalorder %s886_s17, 0 }
  0x7e   : > { %p396_p1 = pnand %p402_p13, %p887_p9 }
  0x80   : > { %584 = dma.done.wait (!%p396_p1), %s267_s21, 128  }
  0x81   : > { %586 = vsyncadd (!%p396_p1), %s267_s21, 4294967168  ;;  %s19_s16 = sadd.s32 1, %s617_s16   ;;  %s888_s22 = sld [smem:[#allocation12_spill]] }
  0x82   : > { %p16_p0 = scmp.ge.s32.totalorder %s19_s16, 6   ;;  %s889_s9 = smov %s593_s10 }
  0x83   : > { %s890_s10 = smov %s597_s11  ;;  %s891_s11 = smov %s757_s23 }
  0x84   : > { %s892_s12 = smov %s609_s14  ;;  %s893_s13 = smov %s613_s15 }
  0x85   : > { %s895_s15 = smov %s901_s27  ;;  %18 = sbr.rel (!%p16_p0) target bundleno = 10 (0xa), region = 85 }
  0x87   : > { %s894_s14 = smov %s888_s22 }
  0x8c   :  { %272 = vsyncpa [#allocation3], 1 }
  0x8d   :  { %274 = vsyncpa [#allocation3 + $0x1], 1 }
  0x8e   :  { %275 = vsyncpa [#allocation4], 1 }
  0x8f   :  { %277 = vsyncpa [#allocation4 + $0x1], 1 }
  0x90   :  { %278 = vsyncpa [#allocation5], 1 }
  0x91   :  { %280 = vsyncpa [#allocation5 + $0x1], 1 }

</bundles_post_ra>
